<compile_context>
chip_gen: v7x
topology: tpu7x:2x2x1
jax: 0.10.0
libtpu: 0.0.40
codegen_flags: <defaults>
</compile_context>

<pallas_src>
import jax
import jax.numpy as jnp
from jax.experimental import pallas as pl
from jax.experimental.pallas import tpu as pltpu

IN_DIM = 216
HID_DIM = 108
HID_PAD = 128   # zero-padded hidden width (lane-dense)
OUT_DIM = 1


def _round_up(a: int, m: int) -> int:
    return ((a + m - 1) // m) * m


def mlp_kernel(x_ref, w1_ref, b1_ref, w2_ref, b2_ref, o_ref):
    # Layer 1: (TB, 216) @ (216, 128) on the MXU, f32 accumulation.
    h = jnp.dot(x_ref[...], w1_ref[...], preferred_element_type=jnp.float32)
    h = jnp.maximum(h + b1_ref[...], 0.0)                       # +bias, ReLU
    # Layer 2: N=1 "matmul" as VPU multiply + cross-lane (XLU) reduction.
    y = jnp.sum(h * w2_ref[...], axis=-1, keepdims=True)        # (TB, 1)
    y = y + b2_ref[0]                                           # scalar bias (SMEM)
    # Final ReLU then negate.
    o_ref[...] = (-jnp.maximum(y, 0.0)).astype(o_ref.dtype)


def my_model_forward(x, w1, b1, w2, b2, *, tile_b=1024):
    """Forward pass of MyModel.

    x : (B, 216)            activations (f32 or bf16)
    w1: (216, 108)          = linear1.weight.T  (f32 or bf16)
    b1: (108,) or (1, 108)  = linear1.bias
    w2: (108, 1) / (108,)   = linear2.weight.T
    b2: scalar / (1,)       = linear2.bias
    returns (B, 1) float32
    """
    B = x.shape[0]

    # ---- weight prep: zero-pad hidden 108 -> 128 (numerically identity) ----
    w1p = jnp.pad(w1, ((0, 0), (0, HID_PAD - HID_DIM)))
    b1p = jnp.pad(jnp.reshape(b1, (1, HID_DIM)).astype(jnp.float32),
                  ((0, 0), (0, HID_PAD - HID_DIM)))
    w2p = jnp.pad(jnp.reshape(w2, (1, HID_DIM)).astype(jnp.float32),
                  ((0, 0), (0, HID_PAD - HID_DIM)))
    b2p = jnp.reshape(jnp.asarray(b2, dtype=jnp.float32), (1,))

    # ---- batch tiling: big tiles, but keep >= 2 grid steps (v7x megacore) ----
    cap = _round_up(pl.cdiv(B, 2), 8)
    tb = max(8, _round_up(min(tile_b, cap), 8))
    b_pad = _round_up(B, tb)
    if b_pad != B:
        x = jnp.pad(x, ((0, b_pad - B), (0, 0)))
    grid = (b_pad // tb,)

    # ---- VMEM budget: only raise the scoped limit if the default may not fit ----
    x_item = jnp.dtype(x.dtype).itemsize
    w_item = jnp.dtype(w1p.dtype).itemsize
    vmem_est = (2 * tb * IN_DIM * x_item           # double-buffered x blocks
                + 2 * tb * OUT_DIM * 4             # double-buffered out blocks
                + IN_DIM * HID_PAD * w_item        # resident w1
                + 2 * HID_PAD * 4                  # resident b1, w2
                + tb * HID_PAD * 4)                # h intermediate
    vmem_limit = None
    if vmem_est > (14 << 20):                      # v5e default scoped VMEM ~16 MiB
        vmem_limit = int(min(max(2 * vmem_est, 32 << 20), 64 << 20))

    cost = pl.CostEstimate(
        flops=2 * b_pad * IN_DIM * HID_PAD + 3 * b_pad * HID_PAD,
        transcendentals=0,
        bytes_accessed=(b_pad * IN_DIM * x_item + b_pad * OUT_DIM * 4
                        + IN_DIM * HID_PAD * w_item + 3 * HID_PAD * 4),
    )

    out = pl.pallas_call(
        mlp_kernel,
        out_shape=jax.ShapeDtypeStruct((b_pad, OUT_DIM), jnp.float32),
        grid_spec=pltpu.PrefetchScalarGridSpec(
            num_scalar_prefetch=0,
            grid=grid,
            in_specs=[
                pl.BlockSpec((tb, IN_DIM), lambda i: (i, 0)),        # x tile
                pl.BlockSpec((IN_DIM, HID_PAD), lambda i: (0, 0)),   # w1 (resident)
                pl.BlockSpec((1, HID_PAD), lambda i: (0, 0)),        # b1 (resident)
                pl.BlockSpec((1, HID_PAD), lambda i: (0, 0)),        # w2 row (resident)
                pl.BlockSpec(memory_space=pltpu.MemorySpace.SMEM),   # b2 scalar
            ],
            out_specs=pl.BlockSpec((tb, OUT_DIM), lambda i: (i, 0)),
        ),
        compiler_params=pltpu.CompilerParams(
            dimension_semantics=("parallel",),
            vmem_limit_bytes=vmem_limit,
        ),
        cost_estimate=cost,
    )(x, w1p, b1p, w2p, b2p)

    return out[:B]


if __name__ == "__main__":
    key = jax.random.PRNGKey(0)
    kx, k1, k2, k3, k4 = jax.random.split(key, 5)

    B = 32  # small demo batch (grid still gets 2 steps)
    x_f32 = jax.random.normal(kx, (B, IN_DIM), dtype=jnp.float32)

    # torch.nn.init.normal_(mean=0, std=0.01); stored pre-transposed vs PyTorch.
    w1_f32 = 0.01 * jax.random.normal(k1, (IN_DIM, HID_DIM), dtype=jnp.float32)
    b1 = 0.01 * jax.random.normal(k2, (HID_DIM,), dtype=jnp.float32)
    w2 = 0.01 * jax.random.normal(k3, (HID_DIM, OUT_DIM), dtype=jnp.float32)
    b2 = 0.01 * jax.random.normal(k4, (1,), dtype=jnp.float32)

    # Stream activations / w1 in bf16 (halves HBM traffic); accumulation is f32.
    x = x_f32.astype(jnp.bfloat16)
    w1 = w1_f32.astype(jnp.bfloat16)

    out = my_model_forward(x, w1, b1, w2, b2)
    jax.block_until_ready(out)

    # Pure-JAX reference on the same (bf16-rounded) inputs, f32 accumulation.
    xr = x.astype(jnp.float32)
    w1r = w1.astype(jnp.float32)
    h_ref = jnp.maximum(xr @ w1r + b1, 0.0)
    y_ref = -jnp.maximum(h_ref @ w2 + b2, 0.0)

    assert out.shape == (B, OUT_DIM)
    assert jnp.allclose(out, y_ref, atol=1e-4, rtol=1e-4), "mismatch vs reference"

    print("KERNEL_OK")
</pallas_src>

<mosaic_0001>
module attributes {stable_mosaic.version = 11 : i64} {
  func.func @mlp_kernel(%arg0: i32, %arg1: memref<16x216xbf16, #tpu.memory_space<vmem>>, %arg2: memref<216x128xbf16, #tpu.memory_space<vmem>>, %arg3: memref<1x128xf32, #tpu.memory_space<vmem>>, %arg4: memref<1x128xf32, #tpu.memory_space<vmem>>, %arg5: memref<1xf32, #tpu.memory_space<smem>>, %arg6: memref<16x1xf32, #tpu.memory_space<vmem>>) attributes {dimension_semantics = [#tpu.dimension_semantics<parallel>], iteration_bounds = array<i64: 2>, scalar_prefetch = 0 : i64, scratch_operands = 0 : i64, tpu.core_type = #tpu.core_type<tc>, window_params = [{transform_indices = @transform_0, window_bounds = array<i64: 16, 216>}, {pipeline_mode = #tpu.pipeline_mode<synchronous>, transform_indices = @transform_1, window_bounds = array<i64: 216, 128>}, {pipeline_mode = #tpu.pipeline_mode<synchronous>, transform_indices = @transform_2, window_bounds = array<i64: 1, 128>}, {pipeline_mode = #tpu.pipeline_mode<synchronous>, transform_indices = @transform_3, window_bounds = array<i64: 1, 128>}, {transform_indices = @transform_4, window_bounds = array<i64: 1>}, {transform_indices = @transform_5, window_bounds = array<i64: 16, 1>}]} {
    %c0 = arith.constant 0 : index
    %c0_0 = arith.constant 0 : index
    %0 = vector.load %arg1[%c0, %c0_0] : memref<16x216xbf16, #tpu.memory_space<vmem>>, vector<16x216xbf16>
    %c0_1 = arith.constant 0 : index
    %c0_2 = arith.constant 0 : index
    %1 = vector.load %arg2[%c0_1, %c0_2] : memref<216x128xbf16, #tpu.memory_space<vmem>>, vector<216x128xbf16>
    %cst = arith.constant dense<0.000000e+00> : vector<16x128xf32>
    %2 = tpu.matmul %0, %1, %cst {dimension_numbers = #tpu.dot_dimension_numbers<[1], [0], [0], [1], [0, 0, 1, 1], [], []>} : vector<16x216xbf16>, vector<216x128xbf16>, vector<16x128xf32> -> vector<16x128xf32>
    %c0_3 = arith.constant 0 : index
    %c0_4 = arith.constant 0 : index
    %3 = vector.load %arg3[%c0_3, %c0_4] : memref<1x128xf32, #tpu.memory_space<vmem>>, vector<1x128xf32>
    %4 = vector.broadcast %3 : vector<1x128xf32> to vector<16x128xf32>
    %5 = arith.addf %2, %4 : vector<16x128xf32>
    %cst_5 = arith.constant 0.000000e+00 : f32
    %6 = vector.broadcast %cst_5 : f32 to vector<16x128xf32>
    %7 = arith.maximumf %5, %6 : vector<16x128xf32>
    %c0_6 = arith.constant 0 : index
    %c0_7 = arith.constant 0 : index
    %8 = vector.load %arg4[%c0_6, %c0_7] : memref<1x128xf32, #tpu.memory_space<vmem>>, vector<1x128xf32>
    %9 = vector.broadcast %8 : vector<1x128xf32> to vector<16x128xf32>
    %10 = arith.mulf %7, %9 : vector<16x128xf32>
    %cst_8 = arith.constant dense<0.000000e+00> : vector<16xf32>
    %11 = vector.multi_reduction <add>, %10, %cst_8 [1] : vector<16x128xf32> to vector<16xf32>
    %12 = vector.shape_cast %11 : vector<16xf32> to vector<16x1xf32>
    %c0_9 = arith.constant 0 : index
    %13 = memref.load %arg5[%c0_9] : memref<1xf32, #tpu.memory_space<smem>>
    %14 = vector.broadcast %13 : f32 to vector<16x1xf32>
    %15 = arith.addf %12, %14 : vector<16x1xf32>
    %cst_10 = arith.constant 0.000000e+00 : f32
    %16 = vector.broadcast %cst_10 : f32 to vector<16x1xf32>
    %17 = arith.maximumf %15, %16 : vector<16x1xf32>
    %cst_11 = arith.constant 0.000000e+00 : f32
    %18 = vector.broadcast %cst_11 : f32 to vector<16x1xf32>
    %19 = arith.subf %18, %17 : vector<16x1xf32>
    %c0_12 = arith.constant 0 : index
    %c0_13 = arith.constant 0 : index
    %20 = vector.load %arg6[%c0_12, %c0_13] : memref<16x1xf32, #tpu.memory_space<vmem>>, vector<16x1xf32>
    tpu.vector_store %arg6[%c0_12, %c0_13], %19 {strides = array<i32>} : memref<16x1xf32, #tpu.memory_space<vmem>>, vector<16x1xf32>,
    return
  }
  func.func @transform_0(%arg0: i32) -> (i32, i32) {
    %c0_i32 = arith.constant 0 : i32
    %c0_i32_0 = arith.constant 0 : i32
    return %arg0, %c0_i32 : i32, i32
  }
  func.func @transform_1(%arg0: i32) -> (i32, i32) {
    %c0_i32 = arith.constant 0 : i32
    %c0_i32_0 = arith.constant 0 : i32
    %c0_i32_1 = arith.constant 0 : i32
    return %c0_i32, %c0_i32_0 : i32, i32
  }
  func.func @transform_2(%arg0: i32) -> (i32, i32) {
    %c0_i32 = arith.constant 0 : i32
    %c0_i32_0 = arith.constant 0 : i32
    %c0_i32_1 = arith.constant 0 : i32
    return %c0_i32, %c0_i32_0 : i32, i32
  }
  func.func @transform_3(%arg0: i32) -> (i32, i32) {
    %c0_i32 = arith.constant 0 : i32
    %c0_i32_0 = arith.constant 0 : i32
    %c0_i32_1 = arith.constant 0 : i32
    return %c0_i32, %c0_i32_0 : i32, i32
  }
  func.func @transform_4(%arg0: i32) -> i32 {
    %c0_i32 = arith.constant 0 : i32
    %c0_i32_0 = arith.constant 0 : i32
    return %c0_i32 : i32
  }
  func.func @transform_5(%arg0: i32) -> (i32, i32) {
    %c0_i32 = arith.constant 0 : i32
    %c0_i32_0 = arith.constant 0 : i32
    return %arg0, %c0_i32 : i32, i32
  }
}

</mosaic_0001>

<bundles_post_ra>
// kernel: tpu_custom_call.1
= control target key start
LH: loop header
LB: loop body
LE: loop exit
PB: predicated region body
PF: predicated region fallthrough
CT: control target
= control target key end

     0   :  { %s948_s0 = inlined_call_operand.hbm [shape: bf16[32,216], index: 0, kind: input, shape index: {}]   ;;  %s949_s1 = inlined_call_operand.hbm [shape: bf16[216,128], index: 1, kind: input, shape index: {}]   ;;  %s950_s2 = inlined_call_operand.vmem [shape: f32[1,128], index: 2, kind: input, shape index: {}]   ;;  %s951_s3 = inlined_call_operand.vmem [shape: f32[1,128], index: 3, kind: input, shape index: {}]   ;;  %s952_s4 = inlined_call_operand.<no memory space> [shape: f32[1], index: 4, kind: input, shape index: {}]   ;;  %s953_s5 = inlined_call_operand.vmem [shape: f32[32,1], index: 5, kind: output, shape index: {}]  }
   0x1   :  { %10 = sst [smem:[#allocation2]] %s952_s4 }
   0x2   :  { %11 = vsyncpa [#allocation4], 0 }
   0x3   :  { %13 = vsyncpa [#allocation4 + $0x1], 0 }
   0x4   :  { %14 = vsyncpa [#allocation6], 0  ;;  %s790_s20 = smov 0   ;;  %s792_s21 = smov 0  }
   0x5   :  { %s794_s22 = smov 0   ;;  %s796_s23 = smov 0  }
   0x6 LB: > { %s543_s4 = sadd.s32 4294967295, %s748_s23   ;;  %p40_p0 = scmp.ne.s32.totalorder %s740_s21, %s736_s20  ;;  %s748_s23 = sphi %s796_s23, %s970_s23   ;;  %s744_s22 = sphi %s794_s22, %s969_s22   ;;  %s740_s21 = sphi %s792_s21, %s968_s21   ;;  %s736_s20 = sphi %s790_s20, %s967_s20  }
   0x7   : > { %p812_p1 = scmp.eq.s32.totalorder %s543_s4, 0  ;;  %p545_p2 = scmp.ge.s32.totalorder %s748_s23, 1 }
   0x8   : > { %p161_p3 = scmp.lt.s32.totalorder %s748_s23, 3  ;;  %s750_s27 = smov [#allocation5]  }
   0x9   : > { %s958_s24 = scalar_select %p812_p1, 1, 0 }
   0xa   : > { %p820_p4 = por %p812_p1, %p40_p0  ;;  %p824_p5 = pnand %p545_p2, %p161_p3 }
   0xb   : > { %s173_s28 = sshll.u32 %s750_s27, 4  ;;  %s837_s30 = sadd.s32 1, %s748_s23   ;;  %s174_s28 = int_to_ptr.vmem [resolvable:$true] %s173_s28 }
   0xc   : > { %s959_s25 = scalar_select %p820_p4, 1, 0 }
   0xd   : > { %s960_s26 = scalar_select %p824_p5, 1, 0 }
   0xe   : > { %p586_p6 = pneg %p824_p5  ;;  %s27_s6 = sadd.s32 1, %s744_s22 }
   0xf   : > { %s24_s7 = ssub.s32 %s748_s23, %s837_s30  ;;  %s652_s10 = scalar_lea.hbm %s949_s1, 1728 }
  0x10   : > { %p832_p7 = pnand %p586_p6, %p812_p1  ;;  %p653_p8 = scmp.ne.s32.totalorder %s949_s1, %s652_s10 }
  0x11   : > { %p659_p12 = scmp.lt.u32.totalorder %s652_s10, %s949_s1 }
  0x12   : > { %p654_p9 = pneg %p832_p7 }
  0x14   : > { %p655_p10 = pnand %p654_p9, %p653_p8 }
  0x16   : > { %p656_p11 = pneg %p655_p10 }
  0x18   : > { %p661_p13 = pnand %p659_p12, %p656_p11 }
  0x1a   : > { %664 = shalt.err (!%p661_p13)
}
  0x1b   : > { %s665_s15 = scalar_lea.vmem %s174_s28, 1728  ;;  %p673_p6 = scmp.lt.s32.totalorder %s174_s28, %s174_s28 }
  0x1c   : > { %p666_p0 = scmp.ne.s32.totalorder %s174_s28, %s665_s15  ;;  %p674_p1 = scmp.lt.s32.totalorder %s665_s15, %s665_s15 }
  0x1e   : > { %p668_p2 = pnand %p666_p0, %p654_p9  ;;  %p675_p4 = por %p674_p1, %p673_p6 }
  0x20   : > { %p669_p3 = pneg %p668_p2 }
  0x22   : > { %p676_p5 = pnand %p675_p4, %p669_p3 }
  0x24   : > { %679 = shalt.err (!%p676_p5)
}
  0x25   : > { %s751_s16 = smov 64   ;;  %s752_s17 = smov 4  }
  0x26   : > { %589 = dma.hbm_to_vmem [thread:$0]  (!%p832_p7), %s949_s1, 1728, %s174_s28, [#allocation6], %s751_s16, %s751_s16, %s752_s17  }
  0x27   : > { %p25_p8 = scmp.eq.s32.totalorder %s24_s7, 0  ;;  %p34_p9 = scmp.ne.s32.totalorder %s744_s22, %s740_s21 }
  0x28   : > { %p35_p1 = scmp.eq.s32.totalorder %s748_s23, 0  ;;  %p595_p4 = scmp.lt.s32.totalorder %s748_s23, 2 }
  0x29   : > { %s863_s20 = scalar_select %p25_p8, %s744_s22, %s27_s6  }
  0x2a   : > { %p36_p5 = por %p35_p1, %p34_p9  ;;  %s196_s27 = sand.u32 1, %s744_s22  }
  0x2b   : > { %s548_s8 = sshll.u32 %s196_s27, 4  ;;  %s579_s9 = sshll.u32 %s748_s23, 8 }
  0x2c   : > { %s870_s12 = scalar_lea.hbm %s948_s0, %s579_s9  ;;  %s200_s28 = scalar_lea.vmem [#allocation3], %s548_s8 }
  0x2d   : > { %s208_s29 = sshll.u32 %s200_s28, 4  ;;  %p874_p7 = pnand %p595_p4, %p36_p5  ;;  %s872_s29 = int_to_ptr.vmem [resolvable:$true] %s208_s29 }
  0x2e   : > { %s878_s7 = scalar_lea.sflag [#allocation4], %s196_s27  ;;  %s680_s13 = scalar_lea.hbm %s870_s12, 256 }
  0x2f   : > { %p681_p10 = scmp.ne.s32.totalorder %s870_s12, %s680_s13  ;;  %p682_p11 = pneg %p874_p7 }
  0x30   : > { %s685_s16 = scalar_lea.hbm %s948_s0, 512  ;;  %p686_p0 = scmp.lt.u32.totalorder %s870_s12, %s948_s0 }
  0x31   : > { %p683_p12 = pnand %p682_p11, %p681_p10  ;;  %p687_p2 = scmp.lt.u32.totalorder %s685_s16, %s680_s13 }
  0x32   : > { %p689_p6 = scmp.lt.u32.totalorder %s680_s13, %s870_s12 }
  0x33   : > { %p684_p13 = pneg %p683_p12  ;;  %p688_p3 = por %p687_p2, %p686_p0 }
  0x35   : > { %p690_p8 = por %p689_p6, %p688_p3 }
  0x37   : > { %p691_p9 = pnand %p690_p8, %p684_p13 }
  0x39   : > { %694 = shalt.err (!%p691_p9)
}
  0x3a   : > { %s695_s19 = scalar_lea.vmem %s872_s29, 256  ;;  %s753_s27 = smov [#allocation3]  }
  0x3b   : > { %p696_p1 = scmp.ne.s32.totalorder %s872_s29, %s695_s19  ;;  %s700_s8 = sshll.u32 %s753_s27, 4  ;;  %s701_s8 = int_to_ptr.vmem [resolvable:$false] %s700_s8 }
  0x3c   : > { %s702_s9 = scalar_lea.vmem %s701_s8, 512  ;;  %p703_p10 = scmp.lt.s32.totalorder %s872_s29, %s701_s8 }
  0x3d   : > { %p698_p4 = pnand %p696_p1, %p682_p11  ;;  %p704_p12 = scmp.lt.s32.totalorder %s702_s9, %s695_s19 }
  0x3f   : > { %p699_p5 = pneg %p698_p4  ;;  %p705_p0 = por %p704_p12, %p703_p10 }
  0x41   : > { %p706_p2 = pnand %p705_p0, %p699_p5 }
  0x43   : > { %709 = shalt.err (!%p706_p2)
}
  0x44   : > { %s754_s10 = smov 128   ;;  %s755_s11 = smov 8  }
  0x45   : > { %593 = dma.hbm_to_vmem [thread:$0]  (!%p874_p7), %s870_s12, 256, %s872_s29, %s878_s7, %s754_s10, %s754_s10, %s755_s11  }
  0x46   : > { %p963_p11 = scmp.ne.s32.totalorder %s960_s26, 0 }
  0x47   : > { %s222_s28 = sand.u32 (!%p963_p11), 1, %s740_s21   ;;  %p964_p13 = scmp.ne.s32.totalorder (!%p963_p11), %s959_s25, 0 }
  0x48   : > { %220 = sbr.rel (%p963_p11) target bundleno = 511 (0x1ff), region = 40  ;;  %s909_s13 = sshll.u32 (!%p963_p11), %s222_s28, 4 }
  0x49   : > { %s223_s14 = scalar_lea.sflag (!%p963_p11), [#allocation4], %s222_s28  ;;  %s226_s15 = scalar_lea.vmem (!%p963_p11), [#allocation3], %s909_s13 }
  0x4f   : > { %727 = dma.done.wait (%p964_p13), %s223_s14, 256  }
  0x50   : > { %729 = vsyncadd (%p964_p13), %s223_s14, 4294967040  ;;  %p965_p3 = scmp.ne.s32.totalorder %s958_s24, 0 }
  0x52   : > { %731 = dma.done.wait (%p965_p3), [#allocation6], 1728  }
  0x53   : > { %733 = vsyncadd (%p965_p3), [#allocation6], 4294965568  ;;  %v756_v0 = vmov 0   ;;  %v635_v1 = vld [vmem:[#allocation5] sm:$0xff]   ;;  %v636_v2 = vld [vmem:[#allocation5 + $0x8] sm:$0xff]   ;;  %vm391_vm0 = vcmask 719872  }
  0x54   : > { %399 = vmatprep.subr.bf16.mxu0 %v756_v0  ;;  %v637_v3 = vld [vmem:[#allocation5 + $0x10] sm:$0xff]   ;;  %v638_v4 = vld [vmem:[#allocation5 + $0x18] sm:$0xff]   ;;  %v639_v5 = vld [vmem:[#allocation5 + $0x20] sm:$0xff]   ;;  %vm395_vm1 = vcmask 1043456   ;;  %s555_s29 = sshll.u32 %s543_s4, 1  ;;  %s455_s6 = sld [smem:[#allocation2]] }
  0x55   : > { %400 = vmatpush1.bf16.msra.mxu0 %v635_v1  ;;  %v651_v6 = vld [vmem:[%s226_s15 + $0x4] ss:$8 sps:$4 sm:$0xff]   ;;  %v648_v15 = vld [vmem:[#allocation5 + $0x68] ss:$0 sps:$4 sm:$0xff]   ;;  %v557_v18 = vld [vmem:[%s950_s2] ss:$0 sm:$0xff] }
  0x56   : > { %401 = vmatprep.subr.bf16.mxu0 %v756_v0  ;;  %574 = vmatprep.mubr.msk.bf16.mxu0 %vm391_vm0, %v651_v6  ;;  %v640_v7 = vld [vmem:[#allocation5 + $0x28] sm:$0xff]   ;;  %v641_v8 = vld [vmem:[#allocation5 + $0x30] sm:$0xff]   ;;  %v642_v9 = vld [vmem:[#allocation5 + $0x38] sm:$0xff]   ;;  %v397_v16 = vsel %vm395_vm1, %v648_v15, 0  ;;  %p259_p7 = scmp.lt.s32.totalorder %s555_s29, 3  ;;  %vm463_vm2 = vcmask 7168  }
  0x57   : > { %v643_v10 = vld [vmem:[#allocation5 + $0x40] sm:$0xff]   ;;  %v644_v11 = vld [vmem:[#allocation5 + $0x48] sm:$0xff]   ;;  %v645_v12 = vld [vmem:[#allocation5 + $0x50] sm:$0xff]  }
  0x58   : > { %v646_v13 = vld [vmem:[#allocation5 + $0x58] sm:$0xff]   ;;  %v647_v14 = vld [vmem:[#allocation5 + $0x60] sm:$0xff]   ;;  %s972_s29 = smov (!%p259_p7, %s555_s29), 3 }
  0x59   : > { %402 = vmatpush1.bf16.msra.mxu0 %v636_v2  ;;  %v649_v17 = vld [vmem:[%s226_s15] ss:$8 sps:$4 sm:$0xff]   ;;  %s556_s7 = sshll.u32 %s972_s29, 3 }
  0x5a   : > { %403 = vmatprep.subr.bf16.mxu0 %v756_v0  ;;  %v575_v23 = vld [vmem:[%s951_s3] ss:$0 sm:$0xff]  ;;  %v456_v30 = vstv %s455_s6  ;;  %s262_s18 = scalar_lea.vmem %s953_s5, %s556_s7 }
  0x5d   : > { %404 = vmatpush1.bf16.msra.mxu0 %v637_v3 }
  0x5e   : > { %405 = vmatprep.subr.bf16.mxu0 %v756_v0 }
  0x61   : > { %406 = vmatpush1.bf16.msra.mxu0 %v638_v4 }
  0x62   : > { %407 = vmatprep.subr.bf16.mxu0 %v756_v0 }
  0x65   : > { %408 = vmatpush1.bf16.msra.mxu0 %v639_v5 }
  0x66   : > { %409 = vmatprep.subr.bf16.mxu0 %v756_v0 }
  0x69   : > { %410 = vmatpush1.bf16.msra.mxu0 %v640_v7 }
  0x6a   : > { %411 = vmatprep.subr.bf16.mxu0 %v756_v0 }
  0x6d   : > { %412 = vmatpush1.bf16.msra.mxu0 %v641_v8 }
  0x6e   : > { %413 = vmatprep.subr.bf16.mxu0 %v756_v0 }
  0x71   : > { %414 = vmatpush1.bf16.msra.mxu0 %v642_v9 }
  0x72   : > { %415 = vmatprep.subr.bf16.mxu0 %v756_v0 }
  0x75   : > { %416 = vmatpush1.bf16.msra.mxu0 %v643_v10 }
  0x76   : > { %417 = vmatprep.subr.bf16.mxu0 %v756_v0 }
  0x79   : > { %418 = vmatpush1.bf16.msra.mxu0 %v644_v11 }
  0x7a   : > { %419 = vmatprep.subr.bf16.mxu0 %v756_v0 }
  0x7d   : > { %420 = vmatpush1.bf16.msra.mxu0 %v645_v12 }
  0x7e   : > { %421 = vmatprep.subr.bf16.mxu0 %v756_v0 }
  0x81   : > { %422 = vmatpush1.bf16.msra.mxu0 %v646_v13 }
  0x82   : > { %423 = vmatprep.subr.bf16.mxu0 %v756_v0 }
  0x85   : > { %424 = vmatpush1.bf16.msra.mxu0 %v647_v14 }
  0x86   : > { %425 = vmatprep.subr.bf16.mxu0 %v756_v0 }
  0x89   : > { %426 = vmatpush1.bf16.msra.mxu0 %v397_v16 }
  0x8c   : > { %432 = vmatmul.mubr.bf16.vlgmr.msra.gmra.mrb[0].mxu0 %v649_v17 }
 0x15f   : > { %v433_v19 = vpop.f32.mrb[0].mxu0 }
 0x160   : > { %v434_v20 = vadd.f32 %v557_v18, %v433_v19  ;;  %v435_v21 = vpop.f32.mrb[1].mxu0 }
 0x161   : > { %v436_v22 = vpop.f32.mrb[2].mxu0 }
 0x162   : > { %v440_v24 = vmax.f32 %v434_v20, 0.0  ;;  %v437_v25 = vadd.f32 %v557_v18, %v436_v22  ;;  %v438_v26 = vpop.f32.mrb[3].mxu0 }
 0x164   : > { %v441_v27 = vmax.f32 %v437_v25, 0.0  ;;  %v449_v28 = vmul.f32 %v575_v23, %v440_v24 }
 0x166   : > { %451 = vadd.xlane.f32.xlu0 %v449_v28  ;;  %v450_v29 = vmul.f32 %v575_v23, %v441_v27 }
 0x16a   : > { %453 = vadd.xlane.f32.xlu0 %v450_v29 }
 0x1f3   : > { %v452_v31 = vpop.xlane.xlu0 %451 }
 0x1f4   : > { %v457_v32 = vadd.f32 %v456_v30, %v452_v31 }
 0x1f6   : > { %v459_v33 = vmax.f32 %v457_v32, 0.0 }
 0x1f7   : > { %v454_v34 = vpop.xlane.xlu0 %453 }
 0x1f8   : > { %v461_v35 = vsub.f32 0.0, %v459_v33  ;;  %v458_v36 = vadd.f32 %v456_v30, %v454_v34 }
 0x1fa   : > { %464 = vst.msk [vmem:[%s262_s18] sm:$0xff] %vm463_vm2, %v461_v35  ;;  %v460_v37 = vmax.f32 %v458_v36, 0.0 }
 0x1fc   : > { %v462_v38 = vsub.f32 0.0, %v460_v37 }
 0x1fe   : > { %465 = vst.msk [vmem:[%s262_s18 + $0x8] sm:$0xff] %vm463_vm2, %v462_v38 }
 0x1ff PF: > { %s966_s23 = smov %s863_s20  ;;  %p17_p6 = scmp.ge.s32.totalorder %s837_s30, 4  }
 0x200   : > { %s967_s20 = smov %s740_s21  ;;  %s968_s21 = smov %s744_s22 }
 0x201   : > { %s969_s22 = smov %s966_s23  ;;  %s970_s23 = smov %s837_s30 }
 0x202   :  { %19 = sbr.rel (!%p17_p6) target bundleno = 6 (0x6), region = 84 }
 0x209   :  { %488 = vsyncpa [#allocation4], 1 }
 0x20a   :  { %490 = vsyncpa [#allocation4 + $0x1], 1 }
 0x20b   :  { %491 = vsyncpa [#allocation6], 1 }

</bundles_post_ra>
